<compile_context>
chip_gen: v7x
topology: tpu7x:2x2x1
jax: 0.10.0
libtpu: 0.0.40
codegen_flags: <defaults>
</compile_context>

<pallas_src>
import functools

import jax
import jax.numpy as jnp
from jax.experimental import pallas as pl
from jax.experimental.pallas import tpu as pltpu


# ----------------------------- Pallas kernels --------------------------------

def _encoder_kernel_fullk(x_ref, w1_ref, b1_ref, w2_ref, b2_ref, z_ref):
    """Single-K-block path: whole reduction in one MXU call per batch tile."""
    h = jnp.dot(x_ref[...], w1_ref[...], preferred_element_type=jnp.float32)
    h = h + b1_ref[...]                       # f32 bias
    h = jnp.maximum(h, 0.25 * h)              # LeakyReLU(0.25), single vmax
    z = jnp.dot(h.astype(w2_ref.dtype), w2_ref[...],
                preferred_element_type=jnp.float32)
    z_ref[...] = (z + b2_ref[...]).astype(z_ref.dtype)


def _encoder_kernel_ktiled(x_ref, w1_ref, b1_ref, w2_ref, b2_ref, z_ref,
                           acc_ref):
    """K-tiled path for very large gene counts (G in the 10k+ range)."""
    k = pl.program_id(1)

    @pl.when(k == 0)
    def _():
        acc_ref[...] = jnp.zeros_like(acc_ref)

    acc_ref[...] += jnp.dot(x_ref[...], w1_ref[...],
                            preferred_element_type=jnp.float32)

    @pl.when(k == pl.num_programs(1) - 1)
    def _():
        h = acc_ref[...] + b1_ref[...]
        h = jnp.maximum(h, 0.25 * h)
        z = jnp.dot(h.astype(w2_ref.dtype), w2_ref[...],
                    preferred_element_type=jnp.float32)
        z_ref[...] = (z + b2_ref[...]).astype(z_ref.dtype)


# ------------------------------- wrapper --------------------------------------

def _round_up(x, m):
    return (x + m - 1) // m * m


def _pick_k_tile(gp, desired):
    """Largest k_tile <= desired that is a multiple of 128 and divides gp."""
    units = gp // 128
    desired_units = max(1, desired // 128)
    n_steps = -(-units // desired_units)          # ceil
    while units % n_steps != 0:                   # worst case: k_tile = 128
        n_steps += 1
    return (units // n_steps) * 128


def prepare_encoder_params(w1, b1, w2, b2, compute_dtype=jnp.bfloat16):
    """One-time padding + bf16 cast of the encoder parameters.

    Weights are stored transposed vs. PyTorch (w1: [G, H], w2: [H, L]) so the
    kernel computes x @ w1 + b1 etc., numerically identical to x @ W.T + b.
    Done once here so the per-forward hot path touches only x.
    """
    G, H = w1.shape
    H2, L = w2.shape
    assert H2 == H
    Gp = _round_up(G, 128)
    Hp = _round_up(H, 128)
    Lp = _round_up(L, 128)
    w1c = jnp.zeros((Gp, Hp), compute_dtype).at[:G, :H].set(
        w1.astype(compute_dtype))
    w2c = jnp.zeros((Hp, Lp), compute_dtype).at[:H, :L].set(
        w2.astype(compute_dtype))
    b1p = jnp.zeros((1, Hp), jnp.float32).at[0, :H].set(
        b1.astype(jnp.float32).reshape(-1))
    b2p = jnp.zeros((1, Lp), jnp.float32).at[0, :L].set(
        b2.astype(jnp.float32).reshape(-1))
    return {"w1": w1c, "b1": b1p, "w2": w2c, "b2": b2p,
            "G": G, "H": H, "L": L}


def gene_autoencoder_forward(x, params, *,
                             batch_tile=128,
                             max_single_k=4096,
                             k_tile=4096,
                             compute_dtype=jnp.bfloat16):
    """Encoder forward: z = LeakyReLU(x @ w1 + b1, 0.25) @ w2 + b2."""
    B, G = x.shape
    assert G == params["G"]
    L = params["L"]
    w1c, b1p, w2c, b2p = params["w1"], params["b1"], params["w2"], params["b2"]
    Gp, Hp = w1c.shape
    Lp = w2c.shape[1]
    itm = jnp.dtype(compute_dtype).itemsize

    Bp = _round_up(B, batch_tile)
    xc = jnp.zeros((Bp, Gp), compute_dtype).at[:B, :G].set(
        x.astype(compute_dtype))

    const = pl.Buffered(1)   # constant-index params: no double buffering
    n_btiles = Bp // batch_tile

    if Gp <= max_single_k:
        # ---- Single-K path: no reduction axis, no accumulator, no phases ----
        vmem_needed = (
            2 * batch_tile * Gp * itm       # x tile, double buffered
            + Gp * Hp * itm                 # W1 (constant index, single buf)
            + Hp * 4                        # b1
            + Hp * Lp * itm                 # W2
            + Lp * 4                        # b2
            + 2 * batch_tile * Lp * 4       # output tile, double buffered
        )
        vmem_limit = int(min(32 << 20, max(4 << 20, 2 * vmem_needed)))

        zp = pl.pallas_call(
            _encoder_kernel_fullk,
            out_shape=jax.ShapeDtypeStruct((Bp, Lp), jnp.float32),
            grid_spec=pltpu.PrefetchScalarGridSpec(
                num_scalar_prefetch=0,
                grid=(n_btiles,),
                in_specs=[
                    pl.BlockSpec((batch_tile, Gp), lambda i: (i, 0)),
                    pl.BlockSpec((Gp, Hp), lambda i: (0, 0),
                                 pipeline_mode=const),
                    pl.BlockSpec((1, Hp), lambda i: (0, 0),
                                 pipeline_mode=const),
                    pl.BlockSpec((Hp, Lp), lambda i: (0, 0),
                                 pipeline_mode=const),
                    pl.BlockSpec((1, Lp), lambda i: (0, 0),
                                 pipeline_mode=const),
                ],
                out_specs=pl.BlockSpec((batch_tile, Lp), lambda i: (i, 0)),
            ),
            compiler_params=pltpu.CompilerParams(
                dimension_semantics=("parallel",),
                vmem_limit_bytes=vmem_limit,
            ),
        )(xc, w1c, b1p, w2c, b2p)
    else:
        # ---- K-tiled fallback for very large gene counts ----
        kt = _pick_k_tile(Gp, k_tile)
        vmem_needed = (
            2 * batch_tile * kt * itm       # x tile, double buffered
            + 2 * kt * Hp * itm             # W1 tile, double buffered
            + Hp * 4                        # b1
            + Hp * Lp * itm                 # W2
            + Lp * 4                        # b2
            + 2 * batch_tile * Lp * 4       # output tile, double buffered
            + batch_tile * Hp * 4           # f32 accumulator scratch
        )
        vmem_limit = int(min(32 << 20, max(4 << 20, 2 * vmem_needed)))

        zp = pl.pallas_call(
            _encoder_kernel_ktiled,
            out_shape=jax.ShapeDtypeStruct((Bp, Lp), jnp.float32),
            grid_spec=pltpu.PrefetchScalarGridSpec(
                num_scalar_prefetch=0,
                grid=(n_btiles, Gp // kt),
                in_specs=[
                    pl.BlockSpec((batch_tile, kt), lambda i, k: (i, k)),
                    pl.BlockSpec((kt, Hp), lambda i, k: (k, 0)),
                    pl.BlockSpec((1, Hp), lambda i, k: (0, 0),
                                 pipeline_mode=const),
                    pl.BlockSpec((Hp, Lp), lambda i, k: (0, 0),
                                 pipeline_mode=const),
                    pl.BlockSpec((1, Lp), lambda i, k: (0, 0),
                                 pipeline_mode=const),
                ],
                out_specs=pl.BlockSpec((batch_tile, Lp), lambda i, k: (i, 0)),
                scratch_shapes=[pltpu.VMEM((batch_tile, Hp), jnp.float32)],
            ),
            compiler_params=pltpu.CompilerParams(
                dimension_semantics=("parallel", "arbitrary"),
                vmem_limit_bytes=vmem_limit,
            ),
        )(xc, w1c, b1p, w2c, b2p)

    return zp[:B, :L]


# ------------------------- deterministic param init --------------------------

def _xavier_uniform(key, fan_in, fan_out, dtype=jnp.float32):
    # Matches torch.nn.init.xavier_uniform_ (gain=1): U(-a, a), a=sqrt(6/(fi+fo))
    limit = (6.0 / (fan_in + fan_out)) ** 0.5
    return jax.random.uniform(key, (fan_in, fan_out), dtype=dtype,
                              minval=-limit, maxval=limit)


def make_params(key, num_genes, intermediate_dim, latent_dim, dtype=jnp.float32):
    k1, k2 = jax.random.split(key)
    w1 = _xavier_uniform(k1, num_genes, intermediate_dim, dtype)   # enc layer 1
    b1 = jnp.full((intermediate_dim,), 0.01, dtype=dtype)          # bias.fill_(0.01)
    w2 = _xavier_uniform(k2, intermediate_dim, latent_dim, dtype)  # enc layer 2
    b2 = jnp.full((latent_dim,), 0.01, dtype=dtype)
    return w1, b1, w2, b2


def _reference(x, w1, b1, w2, b2):
    # Pure-JAX reference with the same bf16-input / f32-accumulate numerics.
    xc = x.astype(jnp.bfloat16)
    w1c = w1.astype(jnp.bfloat16)
    w2c = w2.astype(jnp.bfloat16)
    h = jnp.dot(xc, w1c, preferred_element_type=jnp.float32) + b1[None, :]
    h = jnp.maximum(h, 0.25 * h)
    return jnp.dot(h.astype(jnp.bfloat16), w2c,
                   preferred_element_type=jnp.float32) + b2[None, :]


# ---------------------------------- main --------------------------------------

if __name__ == "__main__":
    # x: [batch, num_genes]; encoder: num_genes -> intermediate_dim -> latent_dim
    batch = 200              # deliberately not a multiple of batch_tile
    num_genes = 1024
    intermediate_dim = 128
    latent_dim = 32

    key = jax.random.PRNGKey(0)
    kx, kp = jax.random.split(key)
    x = jax.random.normal(kx, (batch, num_genes), dtype=jnp.float32)
    w1, b1, w2, b2 = make_params(kp, num_genes, intermediate_dim, latent_dim)

    # One-time parameter preparation (padding + bf16 cast hoisted off hot path).
    params = prepare_encoder_params(w1, b1, w2, b2)

    # Default (single-K) path: no reduction grid axis at this gene count.
    fwd = jax.jit(functools.partial(gene_autoencoder_forward, params=params))
    z = jax.block_until_ready(fwd(x))
    assert z.shape == (batch, latent_dim)

    z_ref = _reference(x, w1, b1, w2, b2)
    assert jnp.allclose(z, z_ref, atol=2e-2, rtol=2e-2), \
        float(jnp.max(jnp.abs(z - z_ref)))

    # Also exercise the K-tiled fallback path (forced by a tiny max_single_k).
    z_t = gene_autoencoder_forward(x, params, max_single_k=256, k_tile=512)
    z_t = jax.block_until_ready(z_t)
    assert jnp.allclose(z_t, z_ref, atol=2e-2, rtol=2e-2), \
        float(jnp.max(jnp.abs(z_t - z_ref)))

    # TODO(synk): GeneAutoencoder.decode() (ChromatinGCN message passing over a
    # torch.load'ed edge_index + pickled accessibility) is not part of forward()
    # and requires external data files, so it is not implemented here.

    print("KERNEL_OK")
</pallas_src>

<mosaic_0001>
module attributes {stable_mosaic.version = 11 : i64} {
  func.func @_encoder_kernel_fullk(%arg0: i32, %arg1: memref<128x1024xbf16, #tpu.memory_space<vmem>>, %arg2: memref<1024x128xbf16, #tpu.memory_space<vmem>>, %arg3: memref<1x128xf32, #tpu.memory_space<vmem>>, %arg4: memref<128x128xbf16, #tpu.memory_space<vmem>>, %arg5: memref<1x128xf32, #tpu.memory_space<vmem>>, %arg6: memref<128x128xf32, #tpu.memory_space<vmem>>) attributes {dimension_semantics = [#tpu.dimension_semantics<parallel>], iteration_bounds = array<i64: 2>, scalar_prefetch = 0 : i64, scratch_operands = 0 : i64, tpu.core_type = #tpu.core_type<tc>, window_params = [{transform_indices = @transform_0, window_bounds = array<i64: 128, 1024>}, {pipeline_mode = #tpu.pipeline_mode<synchronous>, transform_indices = @transform_1, window_bounds = array<i64: 1024, 128>}, {pipeline_mode = #tpu.pipeline_mode<synchronous>, transform_indices = @transform_2, window_bounds = array<i64: 1, 128>}, {pipeline_mode = #tpu.pipeline_mode<synchronous>, transform_indices = @transform_3, window_bounds = array<i64: 128, 128>}, {pipeline_mode = #tpu.pipeline_mode<synchronous>, transform_indices = @transform_4, window_bounds = array<i64: 1, 128>}, {transform_indices = @transform_5, window_bounds = array<i64: 128, 128>}]} {
    %c0 = arith.constant 0 : index
    %c0_0 = arith.constant 0 : index
    %0 = vector.load %arg1[%c0, %c0_0] : memref<128x1024xbf16, #tpu.memory_space<vmem>>, vector<128x1024xbf16>
    %c0_1 = arith.constant 0 : index
    %c0_2 = arith.constant 0 : index
    %1 = vector.load %arg2[%c0_1, %c0_2] : memref<1024x128xbf16, #tpu.memory_space<vmem>>, vector<1024x128xbf16>
    %cst = arith.constant dense<0.000000e+00> : vector<128x128xf32>
    %2 = tpu.matmul %0, %1, %cst {dimension_numbers = #tpu.dot_dimension_numbers<[1], [0], [0], [1], [0, 0, 1, 1], [], []>} : vector<128x1024xbf16>, vector<1024x128xbf16>, vector<128x128xf32> -> vector<128x128xf32>
    %c0_3 = arith.constant 0 : index
    %c0_4 = arith.constant 0 : index
    %3 = vector.load %arg3[%c0_3, %c0_4] : memref<1x128xf32, #tpu.memory_space<vmem>>, vector<1x128xf32>
    %4 = vector.broadcast %3 : vector<1x128xf32> to vector<128x128xf32>
    %5 = arith.addf %2, %4 : vector<128x128xf32>
    %cst_5 = arith.constant 2.500000e-01 : f32
    %6 = vector.broadcast %cst_5 : f32 to vector<128x128xf32>
    %7 = arith.mulf %6, %5 : vector<128x128xf32>
    %8 = arith.maximumf %5, %7 : vector<128x128xf32>
    %9 = arith.truncf %8 : vector<128x128xf32> to vector<128x128xbf16>
    %c0_6 = arith.constant 0 : index
    %c0_7 = arith.constant 0 : index
    %10 = vector.load %arg4[%c0_6, %c0_7] : memref<128x128xbf16, #tpu.memory_space<vmem>>, vector<128x128xbf16>
    %cst_8 = arith.constant dense<0.000000e+00> : vector<128x128xf32>
    %11 = tpu.matmul %9, %10, %cst_8 {dimension_numbers = #tpu.dot_dimension_numbers<[1], [0], [0], [1], [0, 0, 1, 1], [], []>} : vector<128x128xbf16>, vector<128x128xbf16>, vector<128x128xf32> -> vector<128x128xf32>
    %c0_9 = arith.constant 0 : index
    %c0_10 = arith.constant 0 : index
    %12 = vector.load %arg5[%c0_9, %c0_10] : memref<1x128xf32, #tpu.memory_space<vmem>>, vector<1x128xf32>
    %13 = vector.broadcast %12 : vector<1x128xf32> to vector<128x128xf32>
    %14 = arith.addf %11, %13 : vector<128x128xf32>
    %c0_11 = arith.constant 0 : index
    %c0_12 = arith.constant 0 : index
    %15 = vector.load %arg6[%c0_11, %c0_12] : memref<128x128xf32, #tpu.memory_space<vmem>>, vector<128x128xf32>
    tpu.vector_store %arg6[%c0_11, %c0_12], %14 {strides = array<i32>} : memref<128x128xf32, #tpu.memory_space<vmem>>, vector<128x128xf32>,
    return
  }
  func.func @transform_0(%arg0: i32) -> (i32, i32) {
    %c0_i32 = arith.constant 0 : i32
    %c0_i32_0 = arith.constant 0 : i32
    return %arg0, %c0_i32 : i32, i32
  }
  func.func @transform_1(%arg0: i32) -> (i32, i32) {
    %c0_i32 = arith.constant 0 : i32
    %c0_i32_0 = arith.constant 0 : i32
    %c0_i32_1 = arith.constant 0 : i32
    return %c0_i32, %c0_i32_0 : i32, i32
  }
  func.func @transform_2(%arg0: i32) -> (i32, i32) {
    %c0_i32 = arith.constant 0 : i32
    %c0_i32_0 = arith.constant 0 : i32
    %c0_i32_1 = arith.constant 0 : i32
    return %c0_i32, %c0_i32_0 : i32, i32
  }
  func.func @transform_3(%arg0: i32) -> (i32, i32) {
    %c0_i32 = arith.constant 0 : i32
    %c0_i32_0 = arith.constant 0 : i32
    %c0_i32_1 = arith.constant 0 : i32
    return %c0_i32, %c0_i32_0 : i32, i32
  }
  func.func @transform_4(%arg0: i32) -> (i32, i32) {
    %c0_i32 = arith.constant 0 : i32
    %c0_i32_0 = arith.constant 0 : i32
    %c0_i32_1 = arith.constant 0 : i32
    return %c0_i32, %c0_i32_0 : i32, i32
  }
  func.func @transform_5(%arg0: i32) -> (i32, i32) {
    %c0_i32 = arith.constant 0 : i32
    %c0_i32_0 = arith.constant 0 : i32
    return %arg0, %c0_i32 : i32, i32
  }
}

</mosaic_0001>

<bundles_post_ra>
// kernel: gene_autoencoder_forward.1
= control target key start
LH: loop header
LB: loop body
LE: loop exit
PB: predicated region body
PF: predicated region fallthrough
CT: control target
= control target key end

     0   :  { %s2392_s18 = smov 0   ;;  %s2787_s0 = inlined_call_operand.vmem [shape: bf16[256,1024], index: 0, kind: input, shape index: {}]   ;;  %s2788_s1 = inlined_call_operand.vmem [shape: bf16[1024,128], index: 1, kind: input, shape index: {}]   ;;  %s2789_s2 = inlined_call_operand.vmem [shape: f32[1,128], index: 2, kind: input, shape index: {}]   ;;  %s2790_s3 = inlined_call_operand.vmem [shape: bf16[128,128], index: 3, kind: input, shape index: {}]   ;;  %s2791_s4 = inlined_call_operand.vmem [shape: f32[1,128], index: 4, kind: input, shape index: {}]   ;;  %s2792_s5 = inlined_call_operand.vmem [shape: f32[256,128], index: 5, kind: output, shape index: {}]  }
   0x1 LB: > { %s1803_s19 = sadd.s32 4294967295, %s2360_s18   ;;  %p1807_p0 = scmp.ge.s32.totalorder %s2360_s18, 1  ;;  %s2360_s18 = sphi %s2392_s18, %s15_s18  }
   0x2   : > { %p189_p1 = scmp.lt.s32.totalorder %s2360_s18, 3 }
   0x4   : > { %p190_p2 = pnand %p1807_p0, %p189_p1 }
   0x5   : > { %v2282_v0 = vld [vmem:[%s2788_s1 + $0x40] sm:$0xff] (!%p190_p2)   ;;  %v2286_v4 = vld [vmem:[%s2788_s1 + $0x48] sm:$0xff] (!%p190_p2)   ;;  %v2290_v8 = vld [vmem:[%s2788_s1 + $0x50] sm:$0xff] (!%p190_p2)   ;;  %s1808_s29 = sshll.u32 (!%p190_p2), %s1803_s19, 4 }
   0x6   : > { %193 = sbr.rel (%p190_p2) target bundleno = 604 (0x25c), region = 40  ;;  %v2283_v1 = vld [vmem:[%s2788_s1 + $0xc0] sm:$0xff] (!%p190_p2)   ;;  %1954 = vmatprep.subr.bf16.mxu0 (!%p190_p2), %v2282_v0  ;;  %v2287_v5 = vld [vmem:[%s2788_s1 + $0xc8] sm:$0xff] (!%p190_p2)   ;;  %v2291_v9 = vld [vmem:[%s2788_s1 + $0xd0] sm:$0xff] (!%p190_p2)   ;;  %p219_p3 = scmp.lt.s32.totalorder (!%p190_p2), %s1808_s29, 31 }
   0x7   : > { %v2284_v2 = vld [vmem:[%s2788_s1] sm:$0xff] (!%p190_p2)   ;;  %2018 = vmatprep.subr.bf16.mxu1 (!%p190_p2), %v2283_v1  ;;  %v2288_v6 = vld [vmem:[%s2788_s1 + $0x8] sm:$0xff] (!%p190_p2)   ;;  %v2292_v10 = vld [vmem:[%s2788_s1 + $0x10] sm:$0xff] (!%p190_p2)  }
   0x8   : > { %v2285_v3 = vld [vmem:[%s2788_s1 + $0x80] sm:$0xff] (!%p190_p2)   ;;  %1955 = vmatpush3.bf16.msra.mxu0 (!%p190_p2), %v2284_v2  ;;  %v2289_v7 = vld [vmem:[%s2788_s1 + $0x88] sm:$0xff] (!%p190_p2)   ;;  %v2293_v11 = vld [vmem:[%s2788_s1 + $0x90] sm:$0xff] (!%p190_p2)  }
   0x9   : > { %2019 = vmatpush3.bf16.msra.mxu1 (!%p190_p2), %v2285_v3  ;;  %1956 = vmatprep.subr.bf16.mxu0 (!%p190_p2), %v2286_v4  ;;  %v2294_v12 = vld [vmem:[%s2788_s1 + $0x58] sm:$0xff] (!%p190_p2)   ;;  %v2298_v16 = vld [vmem:[%s2788_s1 + $0x60] sm:$0xff] (!%p190_p2)   ;;  %v2302_v20 = vld [vmem:[%s2788_s1 + $0x68] sm:$0xff] (!%p190_p2)  }
   0xa   : > { %2020 = vmatprep.subr.bf16.mxu1 (!%p190_p2), %v2287_v5  ;;  %v2295_v13 = vld [vmem:[%s2788_s1 + $0xd8] sm:$0xff] (!%p190_p2)   ;;  %v2299_v17 = vld [vmem:[%s2788_s1 + $0xe0] sm:$0xff] (!%p190_p2)   ;;  %v2303_v21 = vld [vmem:[%s2788_s1 + $0xe8] sm:$0xff] (!%p190_p2)  }
   0xb   : > { %v2296_v14 = vld [vmem:[%s2788_s1 + $0x18] sm:$0xff] (!%p190_p2)   ;;  %v2300_v18 = vld [vmem:[%s2788_s1 + $0x20] sm:$0xff] (!%p190_p2)   ;;  %v2304_v22 = vld [vmem:[%s2788_s1 + $0x28] sm:$0xff] (!%p190_p2)  }
   0xc   : > { %1957 = vmatpush3.bf16.msra.mxu0 (!%p190_p2), %v2288_v6  ;;  %v2297_v15 = vld [vmem:[%s2788_s1 + $0x98] sm:$0xff] (!%p190_p2)   ;;  %v2301_v19 = vld [vmem:[%s2788_s1 + $0xa0] sm:$0xff] (!%p190_p2)   ;;  %v2305_v23 = vld [vmem:[%s2788_s1 + $0xa8] sm:$0xff] (!%p190_p2)  }
   0xd   : > { %2021 = vmatpush3.bf16.msra.mxu1 %v2289_v7  ;;  %1958 = vmatprep.subr.bf16.mxu0 %v2290_v8  ;;  %s2794_s29 = smov (!%p219_p3, %s1808_s29), 31  ;;  %v2306_v24 = vld [vmem:[%s2788_s1 + $0x70] sm:$0xff]   ;;  %v2310_v28 = vld [vmem:[%s2788_s1 + $0x78] sm:$0xff]   ;;  %v2314_v40 = vld [vmem:[%s2788_s1 + $0x140] sm:$0xff]  }
   0xe   : > { %2022 = vmatprep.subr.bf16.mxu1 %v2291_v9  ;;  %v2307_v25 = vld [vmem:[%s2788_s1 + $0xf0] sm:$0xff]   ;;  %s1953_s28 = sshll.u32 %s2794_s29, 5  ;;  %v2311_v29 = vld [vmem:[%s2788_s1 + $0xf8] sm:$0xff]   ;;  %v2315_v41 = vld [vmem:[%s2788_s1 + $0x100] sm:$0xff]   ;;  %s1812_s10 = sshll.u32 %s2794_s29, 3 }
   0xf   : > { %v2308_v26 = vld [vmem:[%s2788_s1 + $0x30] sm:$0xff]   ;;  %s2498_s19 = scalar_lea.vmem %s2787_s0, %s1953_s28  ;;  %v2312_v30 = vld [vmem:[%s2788_s1 + $0x38] sm:$0xff]   ;;  %v2316_v42 = vld [vmem:[%s2788_s1 + $0x1c0] sm:$0xff]   ;;  %s2766_s15 = scalar_lea.vmem %s2792_s5, %s1812_s10 }
  0x10   : > { %1959 = vmatpush3.bf16.msra.mxu0 %v2292_v10  ;;  %v2309_v27 = vld [vmem:[%s2788_s1 + $0xb0] sm:$0xff]   ;;  %v2313_v31 = vld [vmem:[%s2788_s1 + $0xb8] sm:$0xff]   ;;  %v232_v32 = vld [vmem:[%s2498_s19] sm:$0xff] }
  0x11   : > { %2023 = vmatpush3.bf16.msra.mxu1 %v2293_v11  ;;  %1960 = vmatprep.subr.bf16.mxu0 %v2294_v12  ;;  %v236_v33 = vld [vmem:[%s2498_s19 + $0x20] sm:$0xff]  ;;  %v233_v34 = vld [vmem:[%s2498_s19 + $0x8] sm:$0xff]  ;;  %v2322_v62 = vld [vmem:[%s2788_s1 + $0x150] sm:$0xff]  }
  0x12   : > { %2024 = vmatprep.subr.bf16.mxu1 %v2295_v13  ;;  %v1814_v35 = vcombine.low %v232_v32, %v236_v33  ;;  %v1815_v36 = vcombine.high %v232_v32, %v236_v33  ;;  %v237_v37 = vld [vmem:[%s2498_s19 + $0x28] sm:$0xff]  ;;  %v2317_v43 = vld [vmem:[%s2788_s1 + $0x180] sm:$0xff]   ;;  %v2323_v63 = vld [vmem:[%s2788_s1 + $0x110] sm:$0xff]  }
  0x13   : > { %v1816_v38 = vcombine.low %v233_v34, %v237_v37  ;;  %v1817_v39 = vcombine.high %v233_v34, %v237_v37  ;;  %v240_v44 = vld [vmem:[%s2498_s19 + $0x40] sm:$0xff]  ;;  %v241_v47 = vld [vmem:[%s2498_s19 + $0x48] sm:$0xff]  ;;  %v2324_v0 = vld [vmem:[%s2788_s1 + $0x1d0] sm:$0xff]  }
  0x14   : > { %1961 = vmatpush3.bf16.msra.mxu0 %v2296_v14  ;;  %1167 = vmatprep.mubr.bf16.mxu0 %v1815_v36  ;;  %v244_v45 = vld [vmem:[%s2498_s19 + $0x60] sm:$0xff]  ;;  %v245_v48 = vld [vmem:[%s2498_s19 + $0x68] sm:$0xff]  ;;  %v2325_v1 = vld [vmem:[%s2788_s1 + $0x190] sm:$0xff]  }
  0x15   : > { %2025 = vmatpush3.bf16.msra.mxu1 %v2297_v15  ;;  %1962 = vmatprep.subr.bf16.mxu0 %v2298_v16  ;;  %v1823_v46 = vcombine.high %v240_v44, %v244_v45  ;;  %v1825_v49 = vcombine.high %v241_v47, %v245_v48  ;;  %v2318_v50 = vld [vmem:[%s2788_s1 + $0x148] sm:$0xff]   ;;  %v1822_v51 = vcombine.low %v240_v44, %v244_v45  ;;  %v248_v56 = vld [vmem:[%s2498_s19 + $0x80] sm:$0xff]  ;;  %v2326_v10 = vld [vmem:[%s2788_s1 + $0x158] sm:$0xff]  }
  0x16   : > { %2026 = vmatprep.subr.bf16.mxu1 %v2299_v17  ;;  %1264 = vmatprep.mubr.bf16.mxu1 %v1817_v39  ;;  %v2319_v52 = vld [vmem:[%s2788_s1 + $0x108] sm:$0xff]   ;;  %v1824_v53 = vcombine.low %v241_v47, %v245_v48  ;;  %v252_v57 = vld [vmem:[%s2498_s19 + $0xa0] sm:$0xff]  ;;  %v2327_v11 = vld [vmem:[%s2788_s1 + $0x118] sm:$0xff]  }
  0x17   : > { %v2320_v54 = vld [vmem:[%s2788_s1 + $0x1c8] sm:$0xff]   ;;  %v1831_v60 = vcombine.high %v248_v56, %v252_v57  ;;  %v1830_v2 = vcombine.low %v248_v56, %v252_v57  ;;  %v256_v3 = vld [vmem:[%s2498_s19 + $0xc0] sm:$0xff]  ;;  %v2328_v12 = vld [vmem:[%s2788_s1 + $0x1d8] sm:$0xff]  }
  0x18   : > { %1963 = vmatpush3.bf16.msra.mxu0 %v2300_v18  ;;  %v2321_v55 = vld [vmem:[%s2788_s1 + $0x188] sm:$0xff]   ;;  %v260_v4 = vld [vmem:[%s2498_s19 + $0xe0] sm:$0xff]  ;;  %v2329_v13 = vld [vmem:[%s2788_s1 + $0x198] sm:$0xff]  }
  0x19   : > { %2027 = vmatpush3.bf16.msra.mxu1 %v2301_v19  ;;  %1964 = vmatprep.subr.bf16.mxu0 %v2302_v20  ;;  %v249_v58 = vld [vmem:[%s2498_s19 + $0x88] sm:$0xff]  ;;  %v1839_v7 = vcombine.high %v256_v3, %v260_v4  ;;  %v264_v14 = vld [vmem:[%s2498_s19 + $0x100] sm:$0xff]  ;;  %v1838_v19 = vcombine.low %v256_v3, %v260_v4  ;;  %v2339_v39 = vld [vmem:[%s2788_s1 + $0x130] sm:$0xff]  }
  0x1a   : > { %2028 = vmatprep.subr.bf16.mxu1 %v2303_v21  ;;  %v253_v59 = vld [vmem:[%s2498_s19 + $0xa8] sm:$0xff]  ;;  %v268_v15 = vld [vmem:[%s2498_s19 + $0x120] sm:$0xff]  ;;  %v2343_v48 = vld [vmem:[%s2788_s1 + $0x138] sm:$0xff]  }
  0x1b   : > { %v1833_v61 = vcombine.high %v249_v58, %v253_v59  ;;  %v257_v5 = vld [vmem:[%s2498_s19 + $0xc8] sm:$0xff]  ;;  %v1832_v6 = vcombine.low %v249_v58, %v253_v59  ;;  %v2330_v18 = vld [vmem:[%s2788_s1 + $0x160] sm:$0xff]   ;;  %v1846_v34 = vcombine.low %v264_v14, %v268_v15 }
  0x1c   : > { %1965 = vmatpush3.bf16.msra.mxu0 %v2304_v22  ;;  %v261_v8 = vld [vmem:[%s2498_s19 + $0xe8] sm:$0xff]  ;;  %v2331_v20 = vld [vmem:[%s2788_s1 + $0x120] sm:$0xff]   ;;  %v1847_v22 = vcombine.high %v264_v14, %v268_v15  ;;  %v250_v14 = vld [vmem:[%s2498_s19 + $0x90] sm:$0xff] }
  0x1d   : > { %2029 = vmatpush3.bf16.msra.mxu1 %v2305_v23  ;;  %1966 = vmatprep.subr.bf16.mxu0 %v2306_v24  ;;  %v1841_v9 = vcombine.high %v257_v5, %v261_v8  ;;  %v265_v16 = vld [vmem:[%s2498_s19 + $0x108] sm:$0xff]  ;;  %v1840_v21 = vcombine.low %v257_v5, %v261_v8  ;;  %v2332_v23 = vld [vmem:[%s2788_s1 + $0x1e0] sm:$0xff]   ;;  %v243_v8 = vld [vmem:[%s2498_s19 + $0x58] sm:$0xff] }
  0x1e   : > { %2030 = vmatprep.subr.bf16.mxu1 %v2307_v25  ;;  %v269_v17 = vld [vmem:[%s2498_s19 + $0x128] sm:$0xff]  ;;  %v2333_v25 = vld [vmem:[%s2788_s1 + $0x1a0] sm:$0xff]   ;;  %v254_v15 = vld [vmem:[%s2498_s19 + $0xb0] sm:$0xff] }
  0x1f   : > { %v1849_v24 = vcombine.high %v265_v16, %v269_v17  ;;  %v2336_v32 = vld [vmem:[%s2788_s1 + $0x1e8] sm:$0xff]  }
  0x20   : > { %1967 = vmatpush3.bf16.msra.mxu0 %v2308_v26  ;;  %v272_v26 = vld [vmem:[%s2498_s19 + $0x140] sm:$0xff]  ;;  %v2337_v33 = vld [vmem:[%s2788_s1 + $0x1a8] sm:$0xff]  }
  0x21   : > { %2031 = vmatpush3.bf16.msra.mxu1 %v2309_v27  ;;  %1968 = vmatprep.subr.bf16.mxu0 %v2310_v28  ;;  %v276_v27 = vld [vmem:[%s2498_s19 + $0x160] sm:$0xff]  ;;  %v2334_v28 = vld [vmem:[%s2788_s1 + $0x168] sm:$0xff]  }
  0x22   : > { %2032 = vmatprep.subr.bf16.mxu1 %v2311_v29  ;;  %v273_v29 = vld [vmem:[%s2498_s19 + $0x148] sm:$0xff]  ;;  %v1855_v36 = vcombine.high %v272_v26, %v276_v27  ;;  %v1854_v47 = vcombine.low %v272_v26, %v276_v27  ;;  %v1834_v26 = vcombine.low %v250_v14, %v254_v15 }
  0x23   : > { %v281_v44 = vld [vmem:[%s2498_s19 + $0x188] sm:$0xff] }
  0x24   : > { %1969 = vmatpush3.bf16.msra.mxu0 %v2312_v30  ;;  %v277_v30 = vld [vmem:[%s2498_s19 + $0x168] sm:$0xff] }
  0x25   : > { %2033 = vmatpush3.bf16.msra.mxu1 %v2313_v31  ;;  %2082 = vmatprep.subr.bf16.mxu0 %v2314_v40  ;;  %v2335_v31 = vld [vmem:[%s2788_s1 + $0x128] sm:$0xff]   ;;  %v1857_v37 = vcombine.high %v273_v29, %v277_v30  ;;  %v2340_v40 = vld [vmem:[%s2788_s1 + $0x1f0] sm:$0xff]  }
  0x26   : > { %2146 = vmatprep.subr.bf16.mxu1 %v2316_v42  ;;  %v284_v42 = vld [vmem:[%s2498_s19 + $0x1a0] sm:$0xff]  ;;  %v285_v45 = vld [vmem:[%s2498_s19 + $0x1a8] sm:$0xff] }
  0x27   : > { %1168 = vmatmul.mubr.bf16.vlgmr.msra.gmra.mrb[0].mxu0 %v1814_v35  ;;  %v1848_v35 = vcombine.low %v265_v16, %v269_v17  ;;  %v289_v56 = vld [vmem:[%s2498_s19 + $0x1c8] sm:$0xff]  ;;  %v1864_v59 = vcombine.low %v281_v44, %v285_v45  ;;  %v251_v16 = vld [vmem:[%s2498_s19 + $0x98] sm:$0xff] }
  0x28   : > { %1265 = vmatmul.mubr.bf16.vlgmr.msra.gmra.mrb[0].mxu1 %v1816_v38  ;;  %2083 = vmatpush3.bf16.msra.mxu0 %v2315_v41  ;;  %v2338_v38 = vld [vmem:[%s2788_s1 + $0x170] sm:$0xff]   ;;  %v280_v41 = vld [vmem:[%s2498_s19 + $0x180] sm:$0xff]  ;;  %v293_v57 = vld [vmem:[%s2498_s19 + $0x1e8] sm:$0xff] }
  0x29   : > { %2147 = vmatpush3.bf16.msra.mxu1 %v2317_v43  ;;  %1175 = vmatprep.mubr.bf16.mxu0 %v1823_v46  ;;  %v2341_v43 = vld [vmem:[%s2788_s1 + $0x1b0] sm:$0xff]   ;;  %v2342_v46 = vld [vmem:[%s2788_s1 + $0x178] sm:$0xff]   ;;  %v1862_v58 = vcombine.low %v280_v41, %v284_v42  ;;  %v1872_v3 = vcombine.low %v289_v56, %v293_v57 }
  0x2a   : > { %1272 = vmatprep.mubr.bf16.mxu1 %v1825_v49  ;;  %2084 = vmatprep.subr.bf16.mxu0 %v2318_v50  ;;  %v1856_v49 = vcombine.low %v273_v29, %v277_v30  ;;  %v1863_v50 = vcombine.high %v280_v41, %v284_v42  ;;  %v255_v17 = vld [vmem:[%s2498_s19 + $0xb8] sm:$0xff]  ;;  %v266_v30 = vld [vmem:[%s2498_s19 + $0x110] sm:$0xff] }
  0x2b   : > { %2148 = vmatprep.subr.bf16.mxu1 %v2320_v54  ;;  %v288_v54 = vld [vmem:[%s2498_s19 + $0x1c0] sm:$0xff]  ;;  %v1836_v27 = vcombine.low %v251_v16, %v255_v17  ;;  %v279_v41 = vld [vmem:[%s2498_s19 + $0x178] sm:$0xff] }
  0x2c   : > { %2085 = vmatpush3.bf16.msra.mxu0 %v2319_v52  ;;  %v1865_v52 = vcombine.high %v281_v44, %v285_v45 }
  0x2d   : > { %2149 = vmatpush3.bf16.msra.mxu1 %v2321_v55  ;;  %2086 = vmatprep.subr.bf16.mxu0 %v2322_v62  ;;  %v292_v55 = vld [vmem:[%s2498_s19 + $0x1e0] sm:$0xff]  ;;  %v234_v62 = vld [vmem:[%s2498_s19 + $0x10] sm:$0xff] }
  0x2e   : > { %2150 = vmatprep.subr.bf16.mxu1 %v2324_v0  ;;  %v235_v0 = vld [vmem:[%s2498_s19 + $0x18] sm:$0xff] }
  0x2f   : > { %1176 = vmatmul.mubr.bf16.gmra.mrb[4].mxu0 %v1822_v51  ;;  %v2344_v51 = vld [vmem:[%s2788_s1 + $0x1f8] sm:$0xff]  }
  0x30   : > { %1273 = vmatmul.mubr.bf16.gmra.mrb[4].mxu1 %v1824_v53  ;;  %1183 = vmatprep.mubr.bf16.mxu0 %v1831_v60  ;;  %v2345_v53 = vld [vmem:[%s2788_s1 + $0x1b8] sm:$0xff]   ;;  %v1871_v60 = vcombine.high %v288_v54, %v292_v55 }
  0x31   : > { %1280 = vmatprep.mubr.bf16.mxu1 %v1833_v61  ;;  %2087 = vmatpush3.bf16.msra.mxu0 %v2323_v63  ;;  %v1873_v61 = vcombine.high %v289_v56, %v293_v57  ;;  %v238_v63 = vld [vmem:[%s2498_s19 + $0x30] sm:$0xff]  ;;  %v291_v56 = vld [vmem:[%s2498_s19 + $0x1d8] sm:$0xff] }
  0x32   : > { %2151 = vmatpush3.bf16.msra.mxu1 %v2325_v1  ;;  %2088 = vmatprep.subr.bf16.mxu0 %v2326_v10  ;;  %v239_v1 = vld [vmem:[%s2498_s19 + $0x38] sm:$0xff]  ;;  %v1819_v4 = vcombine.high %v234_v62, %v238_v63  ;;  %v1818_v10 = vcombine.low %v234_v62, %v238_v63 }
  0x33   : > { %2152 = vmatprep.subr.bf16.mxu1 %v2328_v12  ;;  %v1821_v5 = vcombine.high %v235_v0, %v239_v1  ;;  %v295_v57 = vld [vmem:[%s2498_s19 + $0x1f8] sm:$0xff] }
  0x34   : > { %v1876_v63 = vcombine.low %v291_v56, %v295_v57 }
  0x35   : > { %2089 = vmatpush3.bf16.msra.mxu0 %v2327_v11  ;;  %v1820_v11 = vcombine.low %v235_v0, %v239_v1  ;;  %v2346_v0 = vld [vmem:[%s2790_s3] sm:$0xff]   ;;  %v2347_v1 = vld [vmem:[%s2790_s3 + $0x8] sm:$0xff]  }
  0x36   : > { %2153 = vmatpush3.bf16.msra.mxu1 %v2329_v13  ;;  %2090 = vmatprep.subr.bf16.mxu0 %v2330_v18 }
  0x37   : > { %1184 = vmatmul.mubr.bf16.gmra.mrb[8].mxu0 %v1830_v2  ;;  %2154 = vmatprep.subr.bf16.mxu1 %v2332_v23  ;;  %v1870_v2 = vcombine.low %v288_v54, %v292_v55  ;;  %v262_v23 = vld [vmem:[%s2498_s19 + $0xf0] sm:$0xff] }
  0x38   : > { %1281 = vmatmul.mubr.bf16.gmra.mrb[8].mxu1 %v1832_v6  ;;  %1191 = vmatprep.mubr.bf16.mxu0 %v1839_v7  ;;  %v242_v6 = vld [vmem:[%s2498_s19 + $0x50] sm:$0xff] }
  0x39   : > { %1288 = vmatprep.mubr.bf16.mxu1 %v1841_v9  ;;  %2091 = vmatpush3.bf16.msra.mxu0 %v2331_v20  ;;  %v246_v7 = vld [vmem:[%s2498_s19 + $0x70] sm:$0xff]  ;;  %v247_v9 = vld [vmem:[%s2498_s19 + $0x78] sm:$0xff]  ;;  %v1835_v20 = vcombine.high %v250_v14, %v254_v15 }
  0x3a   : > { %2155 = vmatpush3.bf16.msra.mxu1 %v2333_v25  ;;  %2092 = vmatprep.subr.bf16.mxu0 %v2334_v28  ;;  %v1827_v12 = vcombine.high %v242_v6, %v246_v7  ;;  %v1829_v13 = vcombine.high %v243_v8, %v247_v9  ;;  %v1826_v18 = vcombine.low %v242_v6, %v246_v7  ;;  %v263_v25 = vld [vmem:[%s2498_s19 + $0xf8] sm:$0xff]  ;;  %v290_v54 = vld [vmem:[%s2498_s19 + $0x1d0] sm:$0xff] }
  0x3b   : > { %2156 = vmatprep.subr.bf16.mxu1 %v2336_v32  ;;  %v267_v32 = vld [vmem:[%s2498_s19 + $0x118] sm:$0xff]  ;;  %v294_v55 = vld [vmem:[%s2498_s19 + $0x1f0] sm:$0xff] }
  0x3c   : > { %v1874_v62 = vcombine.low %v290_v54, %v294_v55  ;;  %v2352_v6 = vld [vmem:[%s2790_s3 + $0x30] sm:$0xff]   ;;  %v2353_v7 = vld [vmem:[%s2790_s3 + $0x38] sm:$0xff]  }
  0x3d   : > { %2093 = vmatpush3.bf16.msra.mxu0 %v2335_v31  ;;  %v270_v31 = vld [vmem:[%s2498_s19 + $0x130] sm:$0xff] }
  0x3e   : > { %2157 = vmatpush3.bf16.msra.mxu1 %v2337_v33  ;;  %2094 = vmatprep.subr.bf16.mxu0 %v2338_v38  ;;  %v271_v33 = vld [vmem:[%s2498_s19 + $0x138] sm:$0xff]  ;;  %v274_v38 = vld [vmem:[%s2498_s19 + $0x150] sm:$0xff]  ;;  %v1850_v42 = vcombine.low %v266_v30, %v270_v31 }
  0x3f   : > { %1192 = vmatmul.mubr.bf16.gmra.mrb[12].mxu0 %v1838_v19  ;;  %2158 = vmatprep.subr.bf16.mxu1 %v2340_v40  ;;  %v1828_v19 = vcombine.low %v243_v8, %v247_v9  ;;  %v275_v40 = vld [vmem:[%s2498_s19 + $0x158] sm:$0xff] }
  0x40   : > { %1289 = vmatmul.mubr.bf16.gmra.mrb[12].mxu1 %v1840_v21  ;;  %1199 = vmatprep.mubr.bf16.mxu0 %v1847_v22  ;;  %v1837_v21 = vcombine.high %v251_v16, %v255_v17  ;;  %v258_v22 = vld [vmem:[%s2498_s19 + $0xd0] sm:$0xff]  ;;  %v1861_v45 = vcombine.high %v275_v40, %v279_v41 }
  0x41   : > { %1296 = vmatprep.mubr.bf16.mxu1 %v1849_v24  ;;  %2095 = vmatpush3.bf16.msra.mxu0 %v2339_v39  ;;  %v259_v24 = vld [vmem:[%s2498_s19 + $0xd8] sm:$0xff]  ;;  %v1843_v28 = vcombine.high %v258_v22, %v262_v23  ;;  %v278_v39 = vld [vmem:[%s2498_s19 + $0x170] sm:$0xff] }
  0x42   : > { %2159 = vmatpush3.bf16.msra.mxu1 %v2341_v43  ;;  %2096 = vmatprep.subr.bf16.mxu0 %v2342_v46  ;;  %v1845_v29 = vcombine.high %v259_v24, %v263_v25  ;;  %v1852_v43 = vcombine.low %v267_v32, %v271_v33  ;;  %v1859_v44 = vcombine.high %v274_v38, %v278_v39  ;;  %v282_v46 = vld [vmem:[%s2498_s19 + $0x190] sm:$0xff] }
  0x43   : > { %2160 = vmatprep.subr.bf16.mxu1 %v2344_v51  ;;  %v1860_v51 = vcombine.low %v275_v40, %v279_v41 }
  0x45   : > { %2097 = vmatpush3.bf16.msra.mxu0 %v2343_v48  ;;  %v283_v48 = vld [vmem:[%s2498_s19 + $0x198] sm:$0xff] }
  0x46   : > { %2161 = vmatpush3.bf16.msra.mxu1 %v2345_v53  ;;  %2226 = vmatprep.subr.bf16.mxu0 %v2346_v0 }
  0x47   : > { %1200 = vmatmul.mubr.bf16.gmra.mrb[16].mxu0 %v1846_v34  ;;  %v1842_v34 = vcombine.low %v258_v22, %v262_v23  ;;  %2258 = vmatprep.subr.bf16.mxu1 %v2346_v0 }
  0x48   : > { %1297 = vmatmul.mubr.bf16.gmra.mrb[16].mxu1 %v1848_v35  ;;  %1207 = vmatprep.mubr.bf16.mxu0 %v1855_v36  ;;  %v1844_v35 = vcombine.low %v259_v24, %v263_v25  ;;  %v1851_v36 = vcombine.high %v266_v30, %v270_v31 }
  0x49   : > { %1304 = vmatprep.mubr.bf16.mxu1 %v1857_v37  ;;  %v1853_v37 = vcombine.high %v267_v32, %v271_v33 }
  0x4f   : > { %1208 = vmatmul.mubr.bf16.gmra.mrb[20].mxu0 %v1854_v47  ;;  %v286_v47 = vld [vmem:[%s2498_s19 + $0x1b0] sm:$0xff] }
  0x50   : > { %1305 = vmatmul.mubr.bf16.gmra.mrb[20].mxu1 %v1856_v49  ;;  %1215 = vmatprep.mubr.bf16.mxu0 %v1863_v50  ;;  %v287_v49 = vld [vmem:[%s2498_s19 + $0x1b8] sm:$0xff]  ;;  %v1858_v50 = vcombine.low %v274_v38, %v278_v39 }
  0x51   : > { %1312 = vmatprep.mubr.bf16.mxu1 %v1865_v52  ;;  %v1867_v52 = vcombine.high %v282_v46, %v286_v47  ;;  %v1869_v53 = vcombine.high %v283_v48, %v287_v49 }
  0x57   : > { %1216 = vmatmul.mubr.bf16.gmra.mrb[24].mxu0 %v1862_v58  ;;  %v1866_v58 = vcombine.low %v282_v46, %v286_v47 }
  0x58   : > { %1313 = vmatmul.mubr.bf16.gmra.mrb[24].mxu1 %v1864_v59  ;;  %1223 = vmatprep.mubr.bf16.mxu0 %v1871_v60  ;;  %v1868_v59 = vcombine.low %v283_v48, %v287_v49  ;;  %v1875_v60 = vcombine.high %v290_v54, %v294_v55 }
  0x59   : > { %1320 = vmatprep.mubr.bf16.mxu1 %v1873_v61  ;;  %v1877_v61 = vcombine.high %v291_v56, %v295_v57 }
  0x5f   : > { %1224 = vmatmul.mubr.bf16.gmra.mrb[28].mxu0 %v1870_v2  ;;  %v2348_v2 = vld [vmem:[%s2790_s3 + $0x10] sm:$0xff]  }
  0x60   : > { %1321 = vmatmul.mubr.bf16.gmra.mrb[28].mxu1 %v1872_v3  ;;  %1361 = vmatprep.mubr.bf16.mxu0 %v1819_v4  ;;  %v2349_v3 = vld [vmem:[%s2790_s3 + $0x18] sm:$0xff]   ;;  %v2350_v4 = vld [vmem:[%s2790_s3 + $0x20] sm:$0xff]  }
  0x61   : > { %1458 = vmatprep.mubr.bf16.mxu1 %v1821_v5  ;;  %v2351_v5 = vld [vmem:[%s2790_s3 + $0x28] sm:$0xff]  }
  0x67   : > { %1362 = vmatmul.mubr.bf16.vlgmr.msra.gmra.mrb[32].mxu0 %v1818_v10  ;;  %v2693_v10 = vld [vmem:[%s2789_s2] ss:$0 sm:$0xff] }
  0x68   : > { %1459 = vmatmul.mubr.bf16.vlgmr.msra.gmra.mrb[32].mxu1 %v1820_v11  ;;  %1369 = vmatprep.mubr.bf16.mxu0 %v1827_v12 }
  0x69   : > { %1466 = vmatprep.mubr.bf16.mxu1 %v1829_v13  ;;  %2227 = vmatpush3.bf16.msra.mxu0 %v2346_v0 }
  0x6a   : > { %2266 = vmatpush3.bf16.msra.mxu1 %v2346_v0  ;;  %2228 = vmatprep.subr.bf16.mxu0 %v2347_v1 }
  0x6b   : > { %2259 = vmatprep.subr.bf16.mxu1 %v2347_v1 }
  0x6d   : > { %2229 = vmatpush3.bf16.msra.mxu0 %v2347_v1 }
  0x6e   : > { %2267 = vmatpush3.bf16.msra.mxu1 %v2347_v1  ;;  %2230 = vmatprep.subr.bf16.mxu0 %v2348_v2 }
  0x6f   : > { %1370 = vmatmul.mubr.bf16.gmra.mrb[36].mxu0 %v1826_v18  ;;  %2260 = vmatprep.subr.bf16.mxu1 %v2348_v2 }
  0x70   : > { %1467 = vmatmul.mubr.bf16.gmra.mrb[36].mxu1 %v1828_v19  ;;  %1377 = vmatprep.mubr.bf16.mxu0 %v1835_v20 }
  0x71   : > { %1474 = vmatprep.mubr.bf16.mxu1 %v1837_v21  ;;  %2231 = vmatpush3.bf16.msra.mxu0 %v2348_v2 }
  0x72   : > { %2268 = vmatpush3.bf16.msra.mxu1 %v2348_v2  ;;  %2232 = vmatprep.subr.bf16.mxu0 %v2349_v3 }
  0x73   : > { %2261 = vmatprep.subr.bf16.mxu1 %v2349_v3 }
  0x75   : > { %2233 = vmatpush3.bf16.msra.mxu0 %v2349_v3 }
  0x76   : > { %2269 = vmatpush3.bf16.msra.mxu1 %v2349_v3  ;;  %2234 = vmatprep.subr.bf16.mxu0 %v2350_v4 }
  0x77   : > { %1378 = vmatmul.mubr.bf16.gmra.mrb[40].mxu0 %v1834_v26  ;;  %2262 = vmatprep.subr.bf16.mxu1 %v2350_v4 }
  0x78   : > { %1475 = vmatmul.mubr.bf16.gmra.mrb[40].mxu1 %v1836_v27  ;;  %1385 = vmatprep.mubr.bf16.mxu0 %v1843_v28 }
  0x79   : > { %1482 = vmatprep.mubr.bf16.mxu1 %v1845_v29  ;;  %2235 = vmatpush3.bf16.msra.mxu0 %v2350_v4 }
  0x7a   : > { %2270 = vmatpush3.bf16.msra.mxu1 %v2350_v4  ;;  %2236 = vmatprep.subr.bf16.mxu0 %v2351_v5 }
  0x7b   : > { %2263 = vmatprep.subr.bf16.mxu1 %v2351_v5 }
  0x7d   : > { %2237 = vmatpush3.bf16.msra.mxu0 %v2351_v5 }
  0x7e   : > { %2271 = vmatpush3.bf16.msra.mxu1 %v2351_v5  ;;  %2238 = vmatprep.subr.bf16.mxu0 %v2352_v6 }
  0x7f   : > { %1386 = vmatmul.mubr.bf16.gmra.mrb[44].mxu0 %v1842_v34  ;;  %2264 = vmatprep.subr.bf16.mxu1 %v2352_v6 }
  0x80   : > { %1483 = vmatmul.mubr.bf16.gmra.mrb[44].mxu1 %v1844_v35  ;;  %1393 = vmatprep.mubr.bf16.mxu0 %v1851_v36 }
  0x81   : > { %1490 = vmatprep.mubr.bf16.mxu1 %v1853_v37  ;;  %2239 = vmatpush3.bf16.msra.mxu0 %v2352_v6 }
  0x82   : > { %2272 = vmatpush3.bf16.msra.mxu1 %v2352_v6  ;;  %2240 = vmatprep.subr.bf16.mxu0 %v2353_v7 }
  0x83   : > { %2265 = vmatprep.subr.bf16.mxu1 %v2353_v7 }
  0x85   : > { %2241 = vmatpush3.bf16.msra.mxu0 %v2353_v7 }
  0x86   : > { %2273 = vmatpush3.bf16.msra.mxu1 %v2353_v7 }
  0x87   : > { %1394 = vmatmul.mubr.bf16.gmra.mrb[48].mxu0 %v1850_v42 }
  0x88   : > { %1491 = vmatmul.mubr.bf16.gmra.mrb[48].mxu1 %v1852_v43  ;;  %1401 = vmatprep.mubr.bf16.mxu0 %v1859_v44 }
  0x89   : > { %1498 = vmatprep.mubr.bf16.mxu1 %v1861_v45 }
  0x8f   : > { %1402 = vmatmul.mubr.bf16.gmra.mrb[52].mxu0 %v1858_v50 }
  0x90   : > { %1499 = vmatmul.mubr.bf16.gmra.mrb[52].mxu1 %v1860_v51  ;;  %1409 = vmatprep.mubr.bf16.mxu0 %v1867_v52 }
  0x91   : > { %1506 = vmatprep.mubr.bf16.mxu1 %v1869_v53 }
  0x97   : > { %1410 = vmatmul.mubr.bf16.gmra.mrb[56].mxu0 %v1866_v58 }
  0x98   : > { %1507 = vmatmul.mubr.bf16.gmra.mrb[56].mxu1 %v1868_v59  ;;  %1417 = vmatprep.mubr.bf16.mxu0 %v1875_v60 }
  0x99   : > { %1514 = vmatprep.mubr.bf16.mxu1 %v1877_v61 }
  0x9f   : > { %1418 = vmatmul.mubr.bf16.gmra.mrb[60].mxu0 %v1874_v62 }
  0xa0   : > { %1515 = vmatmul.mubr.bf16.gmra.mrb[60].mxu1 %v1876_v63 }
  0xfa   : > { %v1970_v8 = vpop.f32.mrb[0].mxu0 }
  0xfb   : > { %v2034_v9 = vpop.f32.mrb[0].mxu1  ;;  %v1971_v11 = vpop.f32.mrb[1].mxu0 }
  0xfc   : > { %v1972_v12 = vadd.f32 %v1971_v11, %v1970_v8  ;;  %v2035_v13 = vpop.f32.mrb[1].mxu1  ;;  %v1973_v14 = vpop.f32.mrb[2].mxu0 }
  0xfd   : > { %v2036_v15 = vadd.f32 %v2035_v13, %v2034_v9  ;;  %v2037_v16 = vpop.f32.mrb[2].mxu1  ;;  %v1974_v17 = vpop.f32.mrb[3].mxu0 }
  0xfe   : > { %v1170_v18 = vadd.f32 %v1972_v12, %v2693_v10  ;;  %v1975_v19 = vadd.f32 %v1974_v17, %v1973_v14  ;;  %v2038_v20 = vpop.f32.mrb[3].mxu1 }
  0xff   : > { %v2039_v21 = vadd.f32 %v2038_v20, %v2037_v16 }
 0x100   : > { %v2696_v22 = vadd.f32 %v2036_v15, %v1170_v18  ;;  %v1173_v23 = vadd.f32 %v1975_v19, %v2693_v10 }
 0x102   : > { %v2699_v24 = vadd.f32 %v2039_v21, %v1173_v23  ;;  %v1976_v25 = vpop.f32.mrb[4].mxu0 }
 0x103   : > { %v2040_v26 = vpop.f32.mrb[4].mxu1  ;;  %v1977_v27 = vpop.f32.mrb[5].mxu0 }
 0x104   : > { %v1978_v28 = vadd.f32 %v1977_v27, %v1976_v25  ;;  %v2041_v29 = vpop.f32.mrb[5].mxu1  ;;  %v1979_v30 = vpop.f32.mrb[6].mxu0 }
 0x105   : > { %v2042_v31 = vadd.f32 %v2041_v29, %v2040_v26  ;;  %v2043_v32 = vpop.f32.mrb[6].mxu1  ;;  %v1980_v33 = vpop.f32.mrb[7].mxu0 }
 0x106   : > { %v1178_v34 = vadd.f32 %v1978_v28, %v2693_v10  ;;  %v1981_v35 = vadd.f32 %v1980_v33, %v1979_v30  ;;  %v2044_v36 = vpop.f32.mrb[7].mxu1 }
 0x107   : > { %v2045_v37 = vadd.f32 %v2044_v36, %v2043_v32 }
 0x108   : > { %v2702_v38 = vadd.f32 %v2042_v31, %v1178_v34  ;;  %v1181_v39 = vadd.f32 %v1981_v35, %v2693_v10 }
 0x10a   : > { %v2705_v40 = vadd.f32 %v2045_v37, %v1181_v39  ;;  %v1982_v41 = vpop.f32.mrb[8].mxu0 }
 0x10b   : > { %v2046_v42 = vpop.f32.mrb[8].mxu1  ;;  %v1983_v43 = vpop.f32.mrb[9].mxu0 }
 0x10c   : > { %v1984_v44 = vadd.f32 %v1983_v43, %v1982_v41  ;;  %v2047_v45 = vpop.f32.mrb[9].mxu1  ;;  %v1985_v46 = vpop.f32.mrb[10].mxu0 }
 0x10d   : > { %v2048_v47 = vadd.f32 %v2047_v45, %v2046_v42  ;;  %v2049_v48 = vpop.f32.mrb[10].mxu1  ;;  %v1986_v49 = vpop.f32.mrb[11].mxu0 }
 0x10e   : > { %v1186_v50 = vadd.f32 %v1984_v44, %v2693_v10  ;;  %v1987_v51 = vadd.f32 %v1986_v49, %v1985_v46  ;;  %v2050_v52 = vpop.f32.mrb[11].mxu1 }
 0x10f   : > { %v2051_v53 = vadd.f32 %v2050_v52, %v2049_v48 }
 0x110   : > { %v2708_v54 = vadd.f32 %v2048_v47, %v1186_v50  ;;  %v1189_v55 = vadd.f32 %v1987_v51, %v2693_v10 }
 0x112   : > { %v2711_v56 = vadd.f32 %v2051_v53, %v1189_v55  ;;  %v1988_v57 = vpop.f32.mrb[12].mxu0 }
 0x113   : > { %v2052_v58 = vpop.f32.mrb[12].mxu1  ;;  %v1989_v59 = vpop.f32.mrb[13].mxu0 }
 0x114   : > { %v1990_v60 = vadd.f32 %v1989_v59, %v1988_v57  ;;  %v2053_v61 = vpop.f32.mrb[13].mxu1  ;;  %v1991_v62 = vpop.f32.mrb[14].mxu0 }
 0x115   : > { %v2054_v63 = vadd.f32 %v2053_v61, %v2052_v58  ;;  %v2055_v0 = vpop.f32.mrb[14].mxu1  ;;  %v1992_v1 = vpop.f32.mrb[15].mxu0 }
 0x116   : > { %v1194_v2 = vadd.f32 %v1990_v60, %v2693_v10  ;;  %v1993_v3 = vadd.f32 %v1992_v1, %v1991_v62  ;;  %v2056_v4 = vpop.f32.mrb[15].mxu1 }
 0x117   : > { %v2057_v5 = vadd.f32 %v2056_v4, %v2055_v0 }
 0x118   : > { %v2714_v6 = vadd.f32 %v2054_v63, %v1194_v2  ;;  %v1197_v7 = vadd.f32 %v1993_v3, %v2693_v10 }
 0x11a   : > { %v2717_v8 = vadd.f32 %v2057_v5, %v1197_v7  ;;  %v1994_v9 = vpop.f32.mrb[16].mxu0 }
 0x11b   : > { %v2058_v11 = vpop.f32.mrb[16].mxu1  ;;  %v1995_v12 = vpop.f32.mrb[17].mxu0 }
 0x11c   : > { %v1996_v13 = vadd.f32 %v1995_v12, %v1994_v9  ;;  %v2059_v14 = vpop.f32.mrb[17].mxu1  ;;  %v1997_v15 = vpop.f32.mrb[18].mxu0 }
 0x11d   : > { %v2060_v16 = vadd.f32 %v2059_v14, %v2058_v11  ;;  %v2061_v17 = vpop.f32.mrb[18].mxu1  ;;  %v1998_v18 = vpop.f32.mrb[19].mxu0 }
 0x11e   : > { %v1202_v19 = vadd.f32 %v1996_v13, %v2693_v10  ;;  %v1999_v20 = vadd.f32 %v1998_v18, %v1997_v15  ;;  %v2062_v21 = vpop.f32.mrb[19].mxu1 }
 0x11f   : > { %v2063_v23 = vadd.f32 %v2062_v21, %v2061_v17 }
 0x120   : > { %v2720_v25 = vadd.f32 %v2060_v16, %v1202_v19  ;;  %v1205_v26 = vadd.f32 %v1999_v20, %v2693_v10 }
 0x122   : > { %v2723_v27 = vadd.f32 %v2063_v23, %v1205_v26  ;;  %v2000_v28 = vpop.f32.mrb[20].mxu0 }
 0x123   : > { %v2064_v29 = vpop.f32.mrb[20].mxu1  ;;  %v2001_v30 = vpop.f32.mrb[21].mxu0 }
 0x124   : > { %v2002_v31 = vadd.f32 %v2001_v30, %v2000_v28  ;;  %v2065_v32 = vpop.f32.mrb[21].mxu1  ;;  %v2003_v33 = vpop.f32.mrb[22].mxu0 }
 0x125   : > { %v2066_v34 = vadd.f32 %v2065_v32, %v2064_v29  ;;  %v2067_v35 = vpop.f32.mrb[22].mxu1  ;;  %v2004_v36 = vpop.f32.mrb[23].mxu0 }
 0x126   : > { %v1210_v37 = vadd.f32 %v2002_v31, %v2693_v10  ;;  %v2005_v39 = vadd.f32 %v2004_v36, %v2003_v33  ;;  %v2068_v41 = vpop.f32.mrb[23].mxu1 }
 0x127   : > { %v2069_v42 = vadd.f32 %v2068_v41, %v2067_v35 }
 0x128   : > { %v2726_v43 = vadd.f32 %v2066_v34, %v1210_v37  ;;  %v1213_v44 = vadd.f32 %v2005_v39, %v2693_v10 }
 0x12a   : > { %v2729_v45 = vadd.f32 %v2069_v42, %v1213_v44  ;;  %v2006_v46 = vpop.f32.mrb[24].mxu0 }
 0x12b   : > { %v2070_v47 = vpop.f32.mrb[24].mxu1  ;;  %v2007_v48 = vpop.f32.mrb[25].mxu0 }
 0x12c   : > { %v2008_v49 = vadd.f32 %v2007_v48, %v2006_v46  ;;  %v2071_v50 = vpop.f32.mrb[25].mxu1  ;;  %v2009_v51 = vpop.f32.mrb[26].mxu0 }
 0x12d   : > { %v2072_v52 = vadd.f32 %v2071_v50, %v2070_v47  ;;  %v2073_v53 = vpop.f32.mrb[26].mxu1  ;;  %v2010_v55 = vpop.f32.mrb[27].mxu0 }
 0x12e   : > { %v1218_v57 = vadd.f32 %v2008_v49, %v2693_v10  ;;  %v2011_v58 = vadd.f32 %v2010_v55, %v2009_v51  ;;  %v2074_v59 = vpop.f32.mrb[27].mxu1 }
 0x12f   : > { %v2075_v60 = vadd.f32 %v2074_v59, %v2073_v53 }
 0x130   : > { %v2732_v61 = vadd.f32 %v2072_v52, %v1218_v57  ;;  %v1221_v62 = vadd.f32 %v2011_v58, %v2693_v10 }
 0x132   : > { %v2735_v63 = vadd.f32 %v2075_v60, %v1221_v62  ;;  %v2012_v0 = vpop.f32.mrb[28].mxu0 }
 0x133   : > { %v2076_v1 = vpop.f32.mrb[28].mxu1  ;;  %v2013_v2 = vpop.f32.mrb[29].mxu0 }
 0x134   : > { %v2014_v3 = vadd.f32 %v2013_v2, %v2012_v0  ;;  %v2077_v4 = vpop.f32.mrb[29].mxu1  ;;  %v2015_v5 = vpop.f32.mrb[30].mxu0 }
 0x135   : > { %v2078_v7 = vadd.f32 %v2077_v4, %v2076_v1  ;;  %v2079_v9 = vpop.f32.mrb[30].mxu1  ;;  %v2016_v11 = vpop.f32.mrb[31].mxu0 }
 0x136   : > { %v1226_v12 = vadd.f32 %v2014_v3, %v2693_v10  ;;  %v2017_v13 = vadd.f32 %v2016_v11, %v2015_v5  ;;  %v2080_v14 = vpop.f32.mrb[31].mxu1 }
 0x137   : > { %v2081_v15 = vadd.f32 %v2080_v14, %v2079_v9 }
 0x138   : > { %v2738_v16 = vadd.f32 %v2078_v7, %v1226_v12  ;;  %v1229_v17 = vadd.f32 %v2017_v13, %v2693_v10 }
 0x13a   : > { %v2741_v18 = vadd.f32 %v2081_v15, %v1229_v17  ;;  %v2098_v19 = vpop.f32.mrb[32].mxu0 }
 0x13b   : > { %v2162_v20 = vpop.f32.mrb[32].mxu1  ;;  %v2099_v21 = vpop.f32.mrb[33].mxu0 }
 0x13c   : > { %v2100_v23 = vadd.f32 %v2099_v21, %v2098_v19  ;;  %v2163_v26 = vpop.f32.mrb[33].mxu1  ;;  %v2101_v28 = vpop.f32.mrb[34].mxu0 }
 0x13d   : > { %v2164_v29 = vadd.f32 %v2163_v26, %v2162_v20  ;;  %v2165_v30 = vpop.f32.mrb[34].mxu1  ;;  %v2102_v31 = vpop.f32.mrb[35].mxu0 }
 0x13e   : > { %v1364_v32 = vadd.f32 %v2100_v23, %v2696_v22  ;;  %v2103_v33 = vadd.f32 %v2102_v31, %v2101_v28  ;;  %v2166_v34 = vpop.f32.mrb[35].mxu1 }
 0x13f   : > { %v2167_v35 = vadd.f32 %v2166_v34, %v2165_v30 }
 0x140   : > { %v1461_v36 = vadd.f32 %v2164_v29, %v1364_v32  ;;  %v1367_v37 = vadd.f32 %v2103_v33, %v2699_v24 }
 0x142   : > { %v1523_v10 = vmul.f32 0.25, %v1461_v36  ;;  %v1464_v39 = vadd.f32 %v2167_v35, %v1367_v37  ;;  %v2104_v41 = vpop.f32.mrb[36].mxu0 }
 0x143   : > { %v2168_v42 = vpop.f32.mrb[36].mxu1  ;;  %v2105_v44 = vpop.f32.mrb[37].mxu0 }
 0x144   : > { %v1524_v46 = vmul.f32 0.25, %v1464_v39  ;;  %v2106_v47 = vadd.f32 %v2105_v44, %v2104_v41  ;;  %v2169_v48 = vpop.f32.mrb[37].mxu1  ;;  %v2107_v49 = vpop.f32.mrb[38].mxu0  ;;  %v1539_v53 = vmax.f32 %v1461_v36, %v1523_v10 }
 0x145   : > { %v2170_v50 = vadd.f32 %v2169_v48, %v2168_v42  ;;  %v2171_v51 = vpop.f32.mrb[38].mxu1  ;;  %v2108_v52 = vpop.f32.mrb[39].mxu0 }
 0x146   : > { %v1540_v22 = vmax.f32 %v1464_v39, %v1524_v46  ;;  %v1372_v55 = vadd.f32 %v2106_v47, %v2702_v38  ;;  %v2109_v57 = vadd.f32 %v2108_v52, %v2107_v49  ;;  %v2172_v58 = vpop.f32.mrb[39].mxu1 }
 0x147   : > { %v2173_v59 = vadd.f32 %v2172_v58, %v2171_v51 }
 0x148   : > { %v1469_v24 = vadd.f32 %v2170_v50, %v1372_v55  ;;  %v1375_v60 = vadd.f32 %v2109_v57, %v2705_v40  ;;  %v1555_v62 = vpack.c.bf16 %v1540_v22, %v1539_v53 }
 0x14a   : > { %v1525_v0 = vmul.f32 0.25, %v1469_v24  ;;  %v1472_v1 = vadd.f32 %v2173_v59, %v1375_v60  ;;  %v2110_v2 = vpop.f32.mrb[40].mxu0  ;;  %2242 = vmatprep.mubr.bf16.mxu0 %v1555_v62 }
 0x14b   : > { %v2174_v3 = vpop.f32.mrb[40].mxu1  ;;  %v2111_v4 = vpop.f32.mrb[41].mxu0 }
 0x14c   : > { %v1526_v5 = vmul.f32 0.25, %v1472_v1  ;;  %v2112_v7 = vadd.f32 %v2111_v4, %v2110_v2  ;;  %v2175_v9 = vpop.f32.mrb[41].mxu1  ;;  %v2113_v11 = vpop.f32.mrb[42].mxu0  ;;  %v1541_v14 = vmax.f32 %v1469_v24, %v1525_v0 }
 0x14d   : > { %v2176_v12 = vadd.f32 %v2175_v9, %v2174_v3  ;;  %v2177_v13 = vpop.f32.mrb[42].mxu1  ;;  %v2114_v38 = vpop.f32.mrb[43].mxu0 }
 0x14e   : > { %v1542_v15 = vmax.f32 %v1472_v1, %v1526_v5  ;;  %v1380_v17 = vadd.f32 %v2112_v7, %v2708_v54  ;;  %v2115_v19 = vadd.f32 %v2114_v38, %v2113_v11  ;;  %v2178_v40 = vpop.f32.mrb[43].mxu1 }
 0x14f   : > { %v2179_v20 = vadd.f32 %v2178_v40, %v2177_v13 }
 0x150   : > { %v1556_v21 = vpack.c.bf16 %v1542_v15, %v1541_v14  ;;  %v1477_v23 = vadd.f32 %v2176_v12, %v1380_v17  ;;  %v1383_v26 = vadd.f32 %v2115_v19, %v2711_v56 }
 0x152   : > { %v1527_v28 = vmul.f32 0.25, %v1477_v23  ;;  %v1480_v29 = vadd.f32 %v2179_v20, %v1383_v26  ;;  %v2116_v30 = vpop.f32.mrb[44].mxu0  ;;  %2243 = vmatmul.mubr.bf16.vlgmr.msra.gmra.mrb[64].mxu0 %v1556_v21 }
 0x153   : > { %v2180_v31 = vpop.f32.mrb[44].mxu1  ;;  %v2117_v32 = vpop.f32.mrb[45].mxu0 }
 0x154   : > { %v1528_v33 = vmul.f32 0.25, %v1480_v29  ;;  %v2118_v34 = vadd.f32 %v2117_v32, %v2116_v30  ;;  %v2181_v35 = vpop.f32.mrb[45].mxu1  ;;  %v2119_v36 = vpop.f32.mrb[46].mxu0  ;;  %v1543_v39 = vmax.f32 %v1477_v23, %v1527_v28 }
 0x155   : > { %v2182_v37 = vadd.f32 %v2181_v35, %v2180_v31  ;;  %v2183_v10 = vpop.f32.mrb[46].mxu1  ;;  %v2120_v54 = vpop.f32.mrb[47].mxu0 }
 0x156   : > { %v1544_v41 = vmax.f32 %v1480_v29, %v1528_v33  ;;  %v1388_v42 = vadd.f32 %v2118_v34, %v2714_v6  ;;  %v2121_v44 = vadd.f32 %v2120_v54, %v2119_v36  ;;  %v2184_v46 = vpop.f32.mrb[47].mxu1 }
 0x157   : > { %v2185_v56 = vadd.f32 %v2184_v46, %v2183_v10 }
 0x158   : > { %v1485_v47 = vadd.f32 %v2182_v37, %v1388_v42  ;;  %v1391_v48 = vadd.f32 %v2121_v44, %v2717_v8  ;;  %v1557_v49 = vpack.c.bf16 %v1544_v41, %v1543_v39 }
 0x15a   : > { %v1529_v50 = vmul.f32 0.25, %v1485_v47  ;;  %v1488_v51 = vadd.f32 %v2185_v56, %v1391_v48  ;;  %v2122_v52 = vpop.f32.mrb[48].mxu0  ;;  %2246 = vmatprep.mubr.bf16.mxu0 %v1557_v49 }
 0x15b   : > { %v2186_v53 = vpop.f32.mrb[48].mxu1  ;;  %v2123_v22 = vpop.f32.mrb[49].mxu0 }
 0x15c   : > { %v1530_v55 = vmul.f32 0.25, %v1488_v51  ;;  %v2124_v57 = vadd.f32 %v2123_v22, %v2122_v52  ;;  %v2187_v58 = vpop.f32.mrb[49].mxu1  ;;  %v2125_v59 = vpop.f32.mrb[50].mxu0  ;;  %v1545_v62 = vmax.f32 %v1485_v47, %v1529_v50 }
 0x15d   : > { %v2188_v24 = vadd.f32 %v2187_v58, %v2186_v53  ;;  %v2189_v60 = vpop.f32.mrb[50].mxu1  ;;  %v2126_v6 = vpop.f32.mrb[51].mxu0 }
 0x15e   : > { %v1546_v0 = vmax.f32 %v1488_v51, %v1530_v55  ;;  %v1396_v1 = vadd.f32 %v2124_v57, %v2720_v25  ;;  %v2127_v2 = vadd.f32 %v2126_v6, %v2125_v59  ;;  %v2190_v8 = vpop.f32.mrb[51].mxu1 }
 0x15f   : > { %v2191_v3 = vadd.f32 %v2190_v8, %v2189_v60 }
 0x160   : > { %v1493_v4 = vadd.f32 %v2188_v24, %v1396_v1  ;;  %v1399_v5 = vadd.f32 %v2127_v2, %v2723_v27  ;;  %v1558_v7 = vpack.c.bf16 %v1546_v0, %v1545_v62 }
 0x162   : > { %v1531_v9 = vmul.f32 0.25, %v1493_v4  ;;  %v1496_v11 = vadd.f32 %v2191_v3, %v1399_v5  ;;  %v2128_v12 = vpop.f32.mrb[52].mxu0  ;;  %2247 = vmatmul.mubr.bf16.gmra.mrb[68].mxu0 %v1558_v7 }
 0x163   : > { %v2192_v13 = vpop.f32.mrb[52].mxu1  ;;  %v2129_v38 = vpop.f32.mrb[53].mxu0 }
 0x164   : > { %v1532_v14 = vmul.f32 0.25, %v1496_v11  ;;  %v2130_v15 = vadd.f32 %v2129_v38, %v2128_v12  ;;  %v2193_v17 = vpop.f32.mrb[53].mxu1  ;;  %v2131_v19 = vpop.f32.mrb[54].mxu0  ;;  %v1547_v21 = vmax.f32 %v1493_v4, %v1531_v9 }
 0x165   : > { %v2194_v40 = vadd.f32 %v2193_v17, %v2192_v13  ;;  %v2195_v20 = vpop.f32.mrb[54].mxu1  ;;  %v2132_v25 = vpop.f32.mrb[55].mxu0 }
 0x166   : > { %v1548_v23 = vmax.f32 %v1496_v11, %v1532_v14  ;;  %v1404_v26 = vadd.f32 %v2130_v15, %v2726_v43  ;;  %v2133_v28 = vadd.f32 %v2132_v25, %v2131_v19  ;;  %v2196_v27 = vpop.f32.mrb[55].mxu1 }
 0x167   : > { %v2197_v29 = vadd.f32 %v2196_v27, %v2195_v20 }
 0x168   : > { %v1501_v30 = vadd.f32 %v2194_v40, %v1404_v26  ;;  %v1407_v31 = vadd.f32 %v2133_v28, %v2729_v45  ;;  %v1559_v32 = vpack.c.bf16 %v1548_v23, %v1547_v21 }
 0x16a   : > { %v1533_v33 = vmul.f32 0.25, %v1501_v30  ;;  %v1504_v34 = vadd.f32 %v2197_v29, %v1407_v31  ;;  %v2134_v35 = vpop.f32.mrb[56].mxu0  ;;  %2250 = vmatprep.mubr.bf16.mxu1 %v1559_v32 }
 0x16b   : > { %v2198_v36 = vpop.f32.mrb[56].mxu1  ;;  %v2135_v37 = vpop.f32.mrb[57].mxu0 }
 0x16c   : > { %v1534_v10 = vmul.f32 0.25, %v1504_v34  ;;  %v2136_v54 = vadd.f32 %v2135_v37, %v2134_v35  ;;  %v2199_v39 = vpop.f32.mrb[57].mxu1  ;;  %v2137_v41 = vpop.f32.mrb[58].mxu0  ;;  %v1549_v46 = vmax.f32 %v1501_v30, %v1533_v33 }
 0x16d   : > { %v2200_v42 = vadd.f32 %v2199_v39, %v2198_v36  ;;  %v2201_v44 = vpop.f32.mrb[58].mxu1  ;;  %v2138_v43 = vpop.f32.mrb[59].mxu0 }
 0x16e   : > { %v1550_v56 = vmax.f32 %v1504_v34, %v1534_v10  ;;  %v1412_v47 = vadd.f32 %v2136_v54, %v2732_v61  ;;  %v2139_v48 = vadd.f32 %v2138_v43, %v2137_v41  ;;  %v2202_v45 = vpop.f32.mrb[59].mxu1 }
 0x16f   : > { %v2203_v49 = vadd.f32 %v2202_v45, %v2201_v44 }
 0x170   : > { %v1560_v50 = vpack.c.bf16 %v1550_v56, %v1549_v46  ;;  %v1509_v51 = vadd.f32 %v2200_v42, %v1412_v47  ;;  %v1415_v52 = vadd.f32 %v2139_v48, %v2735_v63 }
 0x172   : > { %v1535_v53 = vmul.f32 0.25, %v1509_v51  ;;  %v1512_v22 = vadd.f32 %v2203_v49, %v1415_v52  ;;  %v2140_v55 = vpop.f32.mrb[60].mxu0  ;;  %2251 = vmatmul.mubr.bf16.vlgmr.msra.gmra.mrb[64].mxu1 %v1560_v50 }
 0x173   : > { %v2204_v57 = vpop.f32.mrb[60].mxu1  ;;  %v2141_v58 = vpop.f32.mrb[61].mxu0 }
 0x174   : > { %v1536_v59 = vmul.f32 0.25, %v1512_v22  ;;  %v2142_v24 = vadd.f32 %v2141_v58, %v2140_v55  ;;  %v2205_v60 = vpop.f32.mrb[61].mxu1  ;;  %v2143_v6 = vpop.f32.mrb[62].mxu0  ;;  %v1551_v1 = vmax.f32 %v1509_v51, %v1535_v53 }
 0x175   : > { %v2206_v62 = vadd.f32 %v2205_v60, %v2204_v57  ;;  %v2207_v0 = vpop.f32.mrb[62].mxu1  ;;  %v2144_v61 = vpop.f32.mrb[63].mxu0 }
 0x176   : > { %v1552_v2 = vmax.f32 %v1512_v22, %v1536_v59  ;;  %v1420_v8 = vadd.f32 %v2142_v24, %v2738_v16  ;;  %v2145_v3 = vadd.f32 %v2144_v61, %v2143_v6  ;;  %v2208_v63 = vpop.f32.mrb[63].mxu1  ;;  %v1942_v16 = vld [vmem:[%s2791_s4] ss:$0 sm:$0xff] }
 0x177   : > { %v2209_v4 = vadd.f32 %v2208_v63, %v2207_v0 }
 0x178   : > { %v1517_v5 = vadd.f32 %v2206_v62, %v1420_v8  ;;  %v1423_v7 = vadd.f32 %v2145_v3, %v2741_v18  ;;  %v1561_v9 = vpack.c.bf16 %v1552_v2, %v1551_v1 }
 0x17a   : > { %v1537_v11 = vmul.f32 0.25, %v1517_v5  ;;  %v1520_v12 = vadd.f32 %v2209_v4, %v1423_v7  ;;  %2254 = vmatprep.mubr.bf16.mxu1 %v1561_v9 }
 0x17c   : > { %v1538_v13 = vmul.f32 0.25, %v1520_v12  ;;  %v1553_v38 = vmax.f32 %v1517_v5, %v1537_v11 }
 0x17e   : > { %v1554_v14 = vmax.f32 %v1520_v12, %v1538_v13 }
 0x180   : > { %v1562_v15 = vpack.c.bf16 %v1554_v14, %v1553_v38 }
 0x182   : > { %2255 = vmatmul.mubr.bf16.gmra.mrb[68].mxu1 %v1562_v15 }
 0x225   : > { %v2244_v18 = vpop.f32.mrb[64].mxu0 }
 0x226   : > { %v1677_v17 = vadd.f32 %v2244_v18, %v1942_v16  ;;  %v1668_v19 = vpop.f32.mrb[65].mxu0 }
 0x227   : > { %v1669_v40 = vadd.f32 %v1942_v16, %v1668_v19  ;;  %v2245_v20 = vpop.f32.mrb[66].mxu0 }
 0x228   : > { %1733 = vst [vmem:[%s2766_s15 + $0x10] sm:$0xff] %v1677_v17  ;;  %v1680_v25 = vadd.f32 %v2245_v20, %v1942_v16  ;;  %v1671_v21 = vpop.f32.mrb[67].mxu0 }
 0x229   : > { %1731 = vst [vmem:[%s2766_s15] sm:$0xff] %v1669_v40  ;;  %v1672_v23 = vadd.f32 %v1942_v16, %v1671_v21 }
 0x22a   : > { %1734 = vst [vmem:[%s2766_s15 + $0x18] sm:$0xff] %v1680_v25 }
 0x22b   : > { %1732 = vst [vmem:[%s2766_s15 + $0x8] sm:$0xff] %v1672_v23 }
 0x235   : > { %v2248_v26 = vpop.f32.mrb[68].mxu0 }
 0x236   : > { %v1693_v28 = vadd.f32 %v2248_v26, %v1942_v16  ;;  %v1684_v27 = vpop.f32.mrb[69].mxu0 }
 0x237   : > { %v1685_v29 = vadd.f32 %v1942_v16, %v1684_v27  ;;  %v2249_v30 = vpop.f32.mrb[70].mxu0 }
 0x238   : > { %1737 = vst [vmem:[%s2766_s15 + $0x30] sm:$0xff] %v1693_v28  ;;  %v1696_v31 = vadd.f32 %v2249_v30, %v1942_v16  ;;  %v1687_v32 = vpop.f32.mrb[71].mxu0 }
 0x239   : > { %1735 = vst [vmem:[%s2766_s15 + $0x20] sm:$0xff] %v1685_v29  ;;  %v1688_v33 = vadd.f32 %v1942_v16, %v1687_v32 }
 0x23a   : > { %1738 = vst [vmem:[%s2766_s15 + $0x38] sm:$0xff] %v1696_v31 }
 0x23b   : > { %1736 = vst [vmem:[%s2766_s15 + $0x28] sm:$0xff] %v1688_v33 }
 0x245   : > { %v2252_v34 = vpop.f32.mrb[64].mxu1 }
 0x246   : > { %v1709_v35 = vadd.f32 %v2252_v34, %v1942_v16  ;;  %v1700_v36 = vpop.f32.mrb[65].mxu1 }
 0x247   : > { %v1701_v37 = vadd.f32 %v1942_v16, %v1700_v36  ;;  %v2253_v10 = vpop.f32.mrb[66].mxu1 }
 0x248   : > { %1741 = vst [vmem:[%s2766_s15 + $0x50] sm:$0xff] %v1709_v35  ;;  %v1712_v54 = vadd.f32 %v2253_v10, %v1942_v16  ;;  %v1703_v39 = vpop.f32.mrb[67].mxu1 }
 0x249   : > { %1739 = vst [vmem:[%s2766_s15 + $0x40] sm:$0xff] %v1701_v37  ;;  %v1704_v41 = vadd.f32 %v1942_v16, %v1703_v39 }
 0x24a   : > { %1742 = vst [vmem:[%s2766_s15 + $0x58] sm:$0xff] %v1712_v54 }
 0x24b   : > { %1740 = vst [vmem:[%s2766_s15 + $0x48] sm:$0xff] %v1704_v41 }
 0x255   : > { %v2256_v42 = vpop.f32.mrb[68].mxu1 }
 0x256   : > { %v1725_v44 = vadd.f32 %v2256_v42, %v1942_v16  ;;  %v1716_v43 = vpop.f32.mrb[69].mxu1 }
 0x257   : > { %v1717_v46 = vadd.f32 %v1942_v16, %v1716_v43  ;;  %v2257_v56 = vpop.f32.mrb[70].mxu1 }
 0x258   : > { %1745 = vst [vmem:[%s2766_s15 + $0x70] sm:$0xff] %v1725_v44  ;;  %v1728_v47 = vadd.f32 %v2257_v56, %v1942_v16  ;;  %v1719_v48 = vpop.f32.mrb[71].mxu1 }
 0x259   : > { %1743 = vst [vmem:[%s2766_s15 + $0x60] sm:$0xff] %v1717_v46  ;;  %v1720_v45 = vadd.f32 %v1942_v16, %v1719_v48 }
 0x25a   : > { %1746 = vst [vmem:[%s2766_s15 + $0x78] sm:$0xff] %v1728_v47 }
 0x25b   : > { %1744 = vst [vmem:[%s2766_s15 + $0x68] sm:$0xff] %v1720_v45 }
 0x25c PF: > { %s15_s18 = sadd.s32 1, %s2360_s18  }
 0x25d   : > { %p12_p4 = scmp.ge.s32.totalorder %s15_s18, 4  }
 0x25f   :  { %14 = sbr.rel (!%p12_p4) target bundleno = 1 (0x1), region = 70 }

</bundles_post_ra>
